<compile_context>
chip_gen: v7x
topology: tpu7x:2x2x1
jax: 0.10.0
libtpu: 0.0.40
codegen_flags: <defaults>
</compile_context>

<pallas_src>
import functools

import jax
import jax.numpy as jnp
import numpy as np
from jax import lax
from jax.experimental import pallas as pl
from jax.experimental.pallas import tpu as pltpu

_NEG = -1.0e30  # finite "-inf" for the log-space scan (avoids inf/NaN arithmetic)

# --------------------------- hardware-aware config ---------------------------

_VMEM_CAP = None
_ROLL_OK = None


def _tpu_vmem_capacity() -> int:
    global _VMEM_CAP
    if _VMEM_CAP is None:
        try:
            _VMEM_CAP = int(pltpu.get_tpu_info().vmem_capacity_bytes)
        except Exception:
            _VMEM_CAP = 64 << 20          # conservative (v7x per-core VMEM)
    return _VMEM_CAP


def _vmem_limit_bytes() -> int:
    # explicit scoped-VMEM limit: 3/4 of physical, capped, leaving headroom
    return int(min(_tpu_vmem_capacity() * 3 // 4, 100 << 20))


def _roll_supported() -> bool:
    """Probe once (outside any kernel trace) that pltpu.roll lowers for a
    rank-3 axis-1 shift and matches jnp.roll semantics; otherwise fall back to
    the concat-based shift (always correct, just more copy traffic)."""
    global _ROLL_OK
    if _ROLL_OK is None:
        def _k(x_ref, o_ref):
            o_ref[...] = pltpu.roll(x_ref[...], shift=1, axis=1)
        try:
            x = jnp.arange(2 * 8 * 32, dtype=jnp.float32).reshape(2, 8, 32)
            out = pl.pallas_call(_k, out_shape=jax.ShapeDtypeStruct(x.shape, x.dtype))(x)
            _ROLL_OK = bool(jnp.allclose(out, jnp.roll(x, 1, axis=1)))
        except Exception:
            _ROLL_OK = False
    return _ROLL_OK


# ----------------------------- kernel helpers --------------------------------


def _shift_down(x, d, fill, t_idx, use_roll):
    """Shift (Bb, T, H) down by d along time, filling the first d rows with `fill`."""
    if use_roll:
        rolled = pltpu.roll(x, shift=d, axis=1)     # XLU sublane rotate (free slot)
        return jnp.where(t_idx < d, fill, rolled)   # VPU select, no copy traffic
    Bb, T, H = x.shape
    pad = jnp.full((Bb, d, H), fill, x.dtype)
    return jnp.concatenate([pad, x[:, : T - d, :]], axis=1)


def _cumsum_time(x, t_idx, use_roll):
    """Inclusive prefix sum over axis=1 via Hillis-Steele doubling (log2(T) steps)."""
    T = x.shape[1]
    d = 1
    while d < T:
        x = x + _shift_down(x, d, 0.0, t_idx, use_roll)
        d *= 2
    return x


def _logaddexp(x, y):
    m = jnp.maximum(x, y)
    return m + jnp.log(1.0 + jnp.exp(-jnp.abs(x - y)))


def _logcumsumexp_time(x, t_idx, use_roll):
    """Per-prefix-stable inclusive logcumsumexp over axis=1 (Hillis-Steele)."""
    T = x.shape[1]
    d = 1
    while d < T:
        x = _logaddexp(x, _shift_down(x, d, _NEG, t_idx, use_roll))
        d *= 2
    return x


# ------------------------------ Pallas kernels --------------------------------


def qrnn_layer_kernel(x_ref, w_ref, b_ref, o_ref, *, use_roll):
    """One QRNN layer ('f' mode) for a block of Bb batch elements.

    x_ref: (Bb, T, C) bf16 activations (unpadded; causal taps built in VMEM)
    w_ref: (K*C, 2H) bf16 fused weights [taps stacked on rows, gates z|f on cols]
    b_ref: (1, 2H)   f32 fused bias
    o_ref: (Bb, T, H) bf16 hidden states
    """
    Bb, T, C = x_ref.shape
    KC, H2 = w_ref.shape
    K = KC // C
    H = H2 // 2

    # Build the K causal taps directly in bf16 (MXU input dtype): tap k sees
    # x[t - (K-1-k)], zeros before t=0 (== ConstantPad1d((K-1, 0)) + Conv1d).
    x = x_ref[...].astype(jnp.bfloat16)
    taps = []
    for k in range(K):                                 # static unroll
        s = K - 1 - k
        if s == 0:
            taps.append(x)
        else:
            taps.append(jnp.concatenate(
                [jnp.zeros((Bb, s, C), x.dtype), x[:, : T - s, :]], axis=1))
    xk = jnp.concatenate(taps, axis=-1)                # (Bb, T, K*C) bf16

    # One fused bf16 MXU matmul for all K taps and both gates; f32 accumulation.
    raw = jnp.dot(xk.reshape(Bb * T, KC), w_ref[...],
                  preferred_element_type=jnp.float32) + b_ref[...]
    raw = raw.reshape(Bb, T, H2)

    # Single log-sigmoid pass over the full 2H slab (halves EUP exp/log work
    # vs two H-wide passes); split into gates afterwards.
    log_sig = jnp.minimum(raw, 0.0) - jnp.log(1.0 + jnp.exp(-jnp.abs(raw)))
    log_z = log_sig[..., :H]
    log_f = log_sig[..., H:]
    log_one_minus_f = log_f - raw[..., H:]             # log s(-x) = log s(x) - x (exact)

    # Scan math stays f32 (v5e VPU/EUP have no bf16); iota built once, reused.
    t_idx = lax.broadcasted_iota(jnp.int32, (Bb, T, H), 1)

    # R[t] = sum_{u > t} log_f[u]  (R[T-1] = 0), matching the torch cumsum gymnastics.
    csum_f = _cumsum_time(log_f, t_idx, use_roll)
    R = csum_f[:, T - 1:T, :] - csum_f                 # (Bb, T, H)

    a = log_z + log_one_minus_f + R
    log_hidden = _logcumsumexp_time(a, t_idx, use_roll)
    # TODO(synk): for production-scale T, switch to a chunked two-level scan to
    # cut EUP exp/log work from O(T log T) to O(T).
    # TODO(synk): a lane-dense (Bb, T*H) output layout would turn the H<128
    # masked stores into full-width stores; the bf16 output already halves them.
    o_ref[...] = jnp.exp(log_hidden - R).astype(o_ref.dtype)


def linear_kernel(x_ref, w_ref, b_ref, o_ref):
    o_ref[...] = (jnp.dot(x_ref[...], w_ref[...],
                          preferred_element_type=jnp.float32)
                  + b_ref[...]).astype(o_ref.dtype)


# -------------------------------- wrappers ------------------------------------


def _pick_block_b(B, T, C, H, K):
    """Batch block size: one full-batch block (maximal matmul M) unless a 2-way
    split still fills the MXU (>=256 rows per half) and fits the VMEM budget."""
    budget = _vmem_limit_bytes() // 2

    def fits(bb):
        rows = bb * T
        # bf16 input + bf16 tap slab + two f32 (2H) slabs + ~4 f32 (H) scan
        # temporaries + bf16 out, x2 margin for the double-buffered pipeline.
        per_row = C * 2 + K * C * 2 + 2 * H * 4 * 2 + H * 4 * 4 + H * 2
        return 2 * rows * per_row <= budget

    if B % 2 == 0 and (B // 2) * T >= 256 and fits(B // 2):
        return B // 2                                  # megacore-friendly split (v7x)
    for bb in range(B, 0, -1):                         # largest divisor of B that fits
        if B % bb == 0 and fits(bb):
            return bb
    return 1


def qrnn_layer(x, w_zf, b_zf):
    """x: (B, T, C) bf16 -> (B, T, H) bf16 hidden states."""
    B, T, C = x.shape
    KC, H2 = w_zf.shape
    K = KC // C
    H = H2 // 2

    block_b = _pick_block_b(B, T, C, H, K)
    grid = (B // block_b,)
    kernel = functools.partial(qrnn_layer_kernel, use_roll=_roll_supported())

    return pl.pallas_call(
        kernel,
        out_shape=jax.ShapeDtypeStruct((B, T, H), jnp.bfloat16),
        grid=grid,
        in_specs=[
            pl.BlockSpec((block_b, T, C), lambda b: (b, 0, 0)),
            pl.BlockSpec((KC, H2), lambda b: (0, 0)),   # weights resident across steps
            pl.BlockSpec((1, H2), lambda b: (0, 0)),
        ],
        out_specs=pl.BlockSpec((block_b, T, H), lambda b: (b, 0, 0)),
        compiler_params=pltpu.CompilerParams(
            dimension_semantics=("parallel",),
            vmem_limit_bytes=_vmem_limit_bytes(),
        ),
    )(x, w_zf, b_zf)


def classifier(x, w16, b2, *, row_block=512):
    """x: (B, T, H) bf16 -> (B, T, V) f32 logits; row-tiled bf16 MXU matmul."""
    # TODO(synk): could be fused into the last QRNN layer's epilogue (cls_w
    # resident in VMEM) to avoid the (B,T,H) HBM round-trip for long sequences.
    B, T, H = x.shape
    V = w16.shape[1]
    rows = B * T
    x2 = x.reshape(rows, H)

    if rows <= row_block:
        row_block = rows                               # single block == full dims
        padded = rows
    else:
        padded = pl.cdiv(rows, row_block) * row_block  # pad rows, keep 512-row tiles
        if padded != rows:
            x2 = jnp.pad(x2, ((0, padded - rows), (0, 0)))

    out = pl.pallas_call(
        linear_kernel,
        out_shape=jax.ShapeDtypeStruct((padded, V), jnp.float32),
        grid=(padded // row_block,),
        in_specs=[
            pl.BlockSpec((row_block, H), lambda i: (i, 0)),
            pl.BlockSpec((H, V), lambda i: (0, 0)),    # weights resident
            pl.BlockSpec((1, V), lambda i: (0, 0)),
        ],
        out_specs=pl.BlockSpec((row_block, V), lambda i: (i, 0)),
        compiler_params=pltpu.CompilerParams(
            dimension_semantics=("parallel",),
            vmem_limit_bytes=_vmem_limit_bytes(),
        ),
    )(x2, w16, b2)
    return out[:rows].reshape(B, T, V)


def prepare_params(params):
    """One-time parameter prep: fuse/pack gate weights (z|f), cast MXU operands
    to bf16 — hoisted out of the per-call path."""
    prepared = dict(
        embedding=params["embedding"].astype(jnp.bfloat16),
        cls_w=params["cls_w"].astype(jnp.bfloat16),
        cls_b=params["cls_b"].reshape(1, -1).astype(jnp.float32),
        layers=[],
    )
    for layer in params["layers"]:
        K, C, H = layer["wz"].shape
        w_zf = jnp.concatenate([layer["wz"], layer["wf"]], axis=-1)
        w_zf = w_zf.reshape(K * C, 2 * H).astype(jnp.bfloat16)
        b_zf = jnp.concatenate([layer["bz"], layer["bf"]]).reshape(1, 2 * H)
        prepared["layers"].append(dict(w_zf=w_zf, b_zf=b_zf.astype(jnp.float32)))
    return prepared


def qrnn_forward(token_ids, prepared):
    # embedding lookup is glue (gather) in plain JAX; table pre-cast to bf16
    x = prepared["embedding"][token_ids]               # (B, T, E) bf16
    for layer in prepared["layers"]:
        x = qrnn_layer(x, layer["w_zf"], layer["b_zf"])
        # dropout p=0.0 between layers -> identity
    return classifier(x, prepared["cls_w"], prepared["cls_b"])


# --------------------------- pure-JAX reference --------------------------------
# Mirrors the kernel's bf16 MXU inputs and bf16 inter-layer activations so the
# comparison is tight; scan math stays f32, matching the kernel.


def qrnn_layer_ref(x, wz, bz, wf, bf):
    T = x.shape[1]
    K = wz.shape[0]
    xb = x.astype(jnp.bfloat16)
    xp = jnp.pad(xb, ((0, 0), (K - 1, 0), (0, 0)))

    def conv(w, b):
        acc = sum(
            jnp.einsum("btc,ch->bth", xp[:, k:k + T], w[k].astype(jnp.bfloat16),
                       preferred_element_type=jnp.float32)
            for k in range(K))
        return acc + b

    raw_z = conv(wz, bz)
    raw_f = conv(wf, bf)
    log_z = jax.nn.log_sigmoid(raw_z)
    log_f = jax.nn.log_sigmoid(raw_f)
    log_omf = jax.nn.log_sigmoid(-raw_f)
    csum = jnp.cumsum(log_f, axis=1)
    R = csum[:, -1:, :] - csum
    a = log_z + log_omf + R
    log_hidden = lax.cumlogsumexp(a, axis=1)
    return jnp.exp(log_hidden - R).astype(jnp.bfloat16)


def qrnn_forward_ref(token_ids, params):
    x = params["embedding"].astype(jnp.bfloat16)[token_ids]
    for layer in params["layers"]:
        x = qrnn_layer_ref(x, layer["wz"], layer["bz"], layer["wf"], layer["bf"])
    logits = jnp.einsum("bth,hv->btv", x, params["cls_w"].astype(jnp.bfloat16),
                        preferred_element_type=jnp.float32)
    return logits + params["cls_b"]


# ---------------------------------- main ---------------------------------------


if __name__ == "__main__":
    # module hyperparameters (small, consistent with the PyTorch module)
    vocab_size = 64
    embedding_dim = 32
    num_layers = 2
    hidden_size = 32
    kernel_size = 3
    batch, seq = 2, 8

    key = jax.random.PRNGKey(0)
    keys = jax.random.split(key, 4 + 4 * num_layers)

    # deterministic parameter init (synthetic; shapes match the nn.Module,
    # conv weights stored as (K, C_in, H) == torch Conv1d weight.permute(2,1,0))
    emb = 0.1 * jax.random.normal(keys[0], (vocab_size, embedding_dim), jnp.float32)
    emb = emb.at[0].set(0.0)                           # padding_idx=0

    layers = []
    ki = 1
    for l in range(num_layers):
        c_in = embedding_dim if l == 0 else hidden_size
        wz = 0.2 * jax.random.normal(keys[ki], (kernel_size, c_in, hidden_size), jnp.float32)
        bz = 0.05 * jax.random.normal(keys[ki + 1], (hidden_size,), jnp.float32)
        wf = 0.2 * jax.random.normal(keys[ki + 2], (kernel_size, c_in, hidden_size), jnp.float32)
        bf = 0.05 * jax.random.normal(keys[ki + 3], (hidden_size,), jnp.float32)
        ki += 4
        layers.append(dict(wz=wz, bz=bz, wf=wf, bf=bf))

    cls_w = 0.1 * jax.random.normal(keys[ki], (hidden_size, vocab_size), jnp.float32)
    cls_b = 0.05 * jax.random.normal(keys[ki + 1], (vocab_size,), jnp.float32)

    params = dict(embedding=emb, layers=layers, cls_w=cls_w, cls_b=cls_b)
    prepared = prepare_params(params)

    token_ids = jax.random.randint(keys[ki + 2], (batch, seq), 0, vocab_size)

    out = jax.block_until_ready(qrnn_forward(token_ids, prepared))
    ref = jax.block_until_ready(qrnn_forward_ref(token_ids, params))

    assert out.shape == (batch, seq, vocab_size)
    np.testing.assert_allclose(np.asarray(out), np.asarray(ref), rtol=2e-2, atol=2e-3)

    print("KERNEL_OK")
</pallas_src>

<mosaic_0001>
module attributes {stable_mosaic.version = 11 : i64} {
  func.func @_k(%arg0: memref<2x8x32xf32, #tpu.memory_space<vmem>>, %arg1: memref<2x8x32xf32, #tpu.memory_space<vmem>>) attributes {dimension_semantics = [], scalar_prefetch = 0 : i64, scratch_operands = 0 : i64, tpu.core_type = #tpu.core_type<tc>} {
    %c0 = arith.constant 0 : index
    %c0_0 = arith.constant 0 : index
    %c0_1 = arith.constant 0 : index
    %0 = vector.load %arg0[%c0, %c0_0, %c0_1] : memref<2x8x32xf32, #tpu.memory_space<vmem>>, vector<2x8x32xf32>
    %c1_i32 = arith.constant 1 : i32
    %1 = tpu.dynamic_rotate %0 by %c1_i32 dim 1 : vector<2x8x32xf32>, i32 -> vector<2x8x32xf32>
    %c0_2 = arith.constant 0 : index
    %c0_3 = arith.constant 0 : index
    %c0_4 = arith.constant 0 : index
    %2 = vector.load %arg1[%c0_2, %c0_3, %c0_4] : memref<2x8x32xf32, #tpu.memory_space<vmem>>, vector<2x8x32xf32>
    tpu.vector_store %arg1[%c0_2, %c0_3, %c0_4], %1 {strides = array<i32>} : memref<2x8x32xf32, #tpu.memory_space<vmem>>, vector<2x8x32xf32>,
    return
  }
}

module attributes {stable_mosaic.version = 11 : i64} {
  func.func @qrnn_layer_kernel(%arg0: i32, %arg1: memref<2x8x32xbf16, #tpu.memory_space<vmem>>, %arg2: memref<96x64xbf16, #tpu.memory_space<vmem>>, %arg3: memref<1x64xf32, #tpu.memory_space<vmem>>, %arg4: memref<2x8x32xbf16, #tpu.memory_space<vmem>>) attributes {dimension_semantics = [#tpu.dimension_semantics<parallel>], iteration_bounds = array<i64: 1>, scalar_prefetch = 0 : i64, scratch_operands = 0 : i64, tpu.core_type = #tpu.core_type<tc>, window_params = [{transform_indices = @transform_0, window_bounds = array<i64: 2, 8, 32>}, {pipeline_mode = #tpu.pipeline_mode<synchronous>, transform_indices = @transform_1, window_bounds = array<i64: 96, 64>}, {pipeline_mode = #tpu.pipeline_mode<synchronous>, transform_indices = @transform_2, window_bounds = array<i64: 1, 64>}, {transform_indices = @transform_3, window_bounds = array<i64: 2, 8, 32>}]} {
    %c0 = arith.constant 0 : index
    %c0_0 = arith.constant 0 : index
    %c0_1 = arith.constant 0 : index
    %0 = vector.load %arg1[%c0, %c0_0, %c0_1] : memref<2x8x32xbf16, #tpu.memory_space<vmem>>, vector<2x8x32xbf16>
    %cst = arith.constant 0.000000e+00 : bf16
    %1 = vector.broadcast %cst : bf16 to vector<2x2x32xbf16>
    %2 = vector.extract_strided_slice %0 {offsets = [0, 0, 0], sizes = [2, 6, 32], strides = [1, 1, 1]} : vector<2x8x32xbf16> to vector<2x6x32xbf16>
    %3 = tpu.concatenate %1, %2 in 1 : vector<2x2x32xbf16>, vector<2x6x32xbf16> -> vector<2x8x32xbf16>
    %cst_2 = arith.constant 0.000000e+00 : bf16
    %4 = vector.broadcast %cst_2 : bf16 to vector<2x1x32xbf16>
    %5 = vector.extract_strided_slice %0 {offsets = [0, 0, 0], sizes = [2, 7, 32], strides = [1, 1, 1]} : vector<2x8x32xbf16> to vector<2x7x32xbf16>
    %6 = tpu.concatenate %4, %5 in 1 : vector<2x1x32xbf16>, vector<2x7x32xbf16> -> vector<2x8x32xbf16>
    %7 = tpu.concatenate %3, %6, %0 in 2 : vector<2x8x32xbf16>, vector<2x8x32xbf16>, vector<2x8x32xbf16> -> vector<2x8x96xbf16>
    %8 = vector.shape_cast %7 : vector<2x8x96xbf16> to vector<16x96xbf16>
    %c0_3 = arith.constant 0 : index
    %c0_4 = arith.constant 0 : index
    %9 = vector.load %arg2[%c0_3, %c0_4] : memref<96x64xbf16, #tpu.memory_space<vmem>>, vector<96x64xbf16>
    %cst_5 = arith.constant dense<0.000000e+00> : vector<16x64xf32>
    %10 = tpu.matmul %8, %9, %cst_5 {dimension_numbers = #tpu.dot_dimension_numbers<[1], [0], [0], [1], [0, 0, 1, 1], [], []>} : vector<16x96xbf16>, vector<96x64xbf16>, vector<16x64xf32> -> vector<16x64xf32>
    %c0_6 = arith.constant 0 : index
    %c0_7 = arith.constant 0 : index
    %11 = vector.load %arg3[%c0_6, %c0_7] : memref<1x64xf32, #tpu.memory_space<vmem>>, vector<1x64xf32>
    %12 = vector.broadcast %11 : vector<1x64xf32> to vector<16x64xf32>
    %13 = arith.addf %10, %12 : vector<16x64xf32>
    %14 = vector.shape_cast %13 : vector<16x64xf32> to vector<2x8x64xf32>
    %cst_8 = arith.constant 0.000000e+00 : f32
    %15 = vector.broadcast %cst_8 : f32 to vector<2x8x64xf32>
    %16 = arith.minimumf %14, %15 : vector<2x8x64xf32>
    %17 = math.absf %14 : vector<2x8x64xf32>
    %cst_9 = arith.constant 0.000000e+00 : f32
    %18 = vector.broadcast %cst_9 : f32 to vector<2x8x64xf32>
    %19 = arith.subf %18, %17 : vector<2x8x64xf32>
    %20 = math.exp %19 : vector<2x8x64xf32>
    %cst_10 = arith.constant 1.000000e+00 : f32
    %21 = vector.broadcast %cst_10 : f32 to vector<2x8x64xf32>
    %22 = arith.addf %21, %20 : vector<2x8x64xf32>
    %23 = math.log %22 : vector<2x8x64xf32>
    %24 = arith.subf %16, %23 : vector<2x8x64xf32>
    %25 = vector.extract_strided_slice %24 {offsets = [0, 0, 0], sizes = [2, 8, 32], strides = [1, 1, 1]} : vector<2x8x64xf32> to vector<2x8x32xf32>
    %26 = vector.extract_strided_slice %24 {offsets = [0, 0, 32], sizes = [2, 8, 32], strides = [1, 1, 1]} : vector<2x8x64xf32> to vector<2x8x32xf32>
    %27 = vector.extract_strided_slice %14 {offsets = [0, 0, 32], sizes = [2, 8, 32], strides = [1, 1, 1]} : vector<2x8x64xf32> to vector<2x8x32xf32>
    %28 = arith.subf %26, %27 : vector<2x8x32xf32>
    %cst_11 = arith.constant 0.000000e+00 : f32
    %29 = vector.broadcast %cst_11 : f32 to vector<2x1x32xf32>
    %30 = vector.extract_strided_slice %26 {offsets = [0, 0, 0], sizes = [2, 7, 32], strides = [1, 1, 1]} : vector<2x8x32xf32> to vector<2x7x32xf32>
    %31 = tpu.concatenate %29, %30 in 1 : vector<2x1x32xf32>, vector<2x7x32xf32> -> vector<2x8x32xf32>
    %32 = arith.addf %26, %31 : vector<2x8x32xf32>
    %cst_12 = arith.constant 0.000000e+00 : f32
    %33 = vector.broadcast %cst_12 : f32 to vector<2x2x32xf32>
    %34 = vector.extract_strided_slice %32 {offsets = [0, 0, 0], sizes = [2, 6, 32], strides = [1, 1, 1]} : vector<2x8x32xf32> to vector<2x6x32xf32>
    %35 = tpu.concatenate %33, %34 in 1 : vector<2x2x32xf32>, vector<2x6x32xf32> -> vector<2x8x32xf32>
    %36 = arith.addf %32, %35 : vector<2x8x32xf32>
    %cst_13 = arith.constant 0.000000e+00 : f32
    %37 = vector.broadcast %cst_13 : f32 to vector<2x4x32xf32>
    %38 = vector.extract_strided_slice %36 {offsets = [0, 0, 0], sizes = [2, 4, 32], strides = [1, 1, 1]} : vector<2x8x32xf32> to vector<2x4x32xf32>
    %39 = tpu.concatenate %37, %38 in 1 : vector<2x4x32xf32>, vector<2x4x32xf32> -> vector<2x8x32xf32>
    %40 = arith.addf %36, %39 : vector<2x8x32xf32>
    %41 = vector.extract_strided_slice %40 {offsets = [0, 7, 0], sizes = [2, 1, 32], strides = [1, 1, 1]} : vector<2x8x32xf32> to vector<2x1x32xf32>
    %42 = vector.broadcast %41 : vector<2x1x32xf32> to vector<2x8x32xf32>
    %43 = arith.subf %42, %40 : vector<2x8x32xf32>
    %44 = arith.addf %25, %28 : vector<2x8x32xf32>
    %45 = arith.addf %44, %43 : vector<2x8x32xf32>
    %cst_14 = arith.constant -1.000000e+30 : f32
    %46 = vector.broadcast %cst_14 : f32 to vector<2x1x32xf32>
    %47 = vector.extract_strided_slice %45 {offsets = [0, 0, 0], sizes = [2, 7, 32], strides = [1, 1, 1]} : vector<2x8x32xf32> to vector<2x7x32xf32>
    %48 = tpu.concatenate %46, %47 in 1 : vector<2x1x32xf32>, vector<2x7x32xf32> -> vector<2x8x32xf32>
    %49 = arith.maximumf %45, %48 : vector<2x8x32xf32>
    %50 = arith.subf %45, %48 : vector<2x8x32xf32>
    %51 = math.absf %50 : vector<2x8x32xf32>
    %cst_15 = arith.constant 0.000000e+00 : f32
    %52 = vector.broadcast %cst_15 : f32 to vector<2x8x32xf32>
    %53 = arith.subf %52, %51 : vector<2x8x32xf32>
    %54 = math.exp %53 : vector<2x8x32xf32>
    %cst_16 = arith.constant 1.000000e+00 : f32
    %55 = vector.broadcast %cst_16 : f32 to vector<2x8x32xf32>
    %56 = arith.addf %55, %54 : vector<2x8x32xf32>
    %57 = math.log %56 : vector<2x8x32xf32>
    %58 = arith.addf %49, %57 : vector<2x8x32xf32>
    %cst_17 = arith.constant -1.000000e+30 : f32
    %59 = vector.broadcast %cst_17 : f32 to vector<2x2x32xf32>
    %60 = vector.extract_strided_slice %58 {offsets = [0, 0, 0], sizes = [2, 6, 32], strides = [1, 1, 1]} : vector<2x8x32xf32> to vector<2x6x32xf32>
    %61 = tpu.concatenate %59, %60 in 1 : vector<2x2x32xf32>, vector<2x6x32xf32> -> vector<2x8x32xf32>
    %62 = arith.maximumf %58, %61 : vector<2x8x32xf32>
    %63 = arith.subf %58, %61 : vector<2x8x32xf32>
    %64 = math.absf %63 : vector<2x8x32xf32>
    %cst_18 = arith.constant 0.000000e+00 : f32
    %65 = vector.broadcast %cst_18 : f32 to vector<2x8x32xf32>
    %66 = arith.subf %65, %64 : vector<2x8x32xf32>
    %67 = math.exp %66 : vector<2x8x32xf32>
    %cst_19 = arith.constant 1.000000e+00 : f32
    %68 = vector.broadcast %cst_19 : f32 to vector<2x8x32xf32>
    %69 = arith.addf %68, %67 : vector<2x8x32xf32>
    %70 = math.log %69 : vector<2x8x32xf32>
    %71 = arith.addf %62, %70 : vector<2x8x32xf32>
    %cst_20 = arith.constant -1.000000e+30 : f32
    %72 = vector.broadcast %cst_20 : f32 to vector<2x4x32xf32>
    %73 = vector.extract_strided_slice %71 {offsets = [0, 0, 0], sizes = [2, 4, 32], strides = [1, 1, 1]} : vector<2x8x32xf32> to vector<2x4x32xf32>
    %74 = tpu.concatenate %72, %73 in 1 : vector<2x4x32xf32>, vector<2x4x32xf32> -> vector<2x8x32xf32>
    %75 = arith.maximumf %71, %74 : vector<2x8x32xf32>
    %76 = arith.subf %71, %74 : vector<2x8x32xf32>
    %77 = math.absf %76 : vector<2x8x32xf32>
    %cst_21 = arith.constant 0.000000e+00 : f32
    %78 = vector.broadcast %cst_21 : f32 to vector<2x8x32xf32>
    %79 = arith.subf %78, %77 : vector<2x8x32xf32>
    %80 = math.exp %79 : vector<2x8x32xf32>
    %cst_22 = arith.constant 1.000000e+00 : f32
    %81 = vector.broadcast %cst_22 : f32 to vector<2x8x32xf32>
    %82 = arith.addf %81, %80 : vector<2x8x32xf32>
    %83 = math.log %82 : vector<2x8x32xf32>
    %84 = arith.addf %75, %83 : vector<2x8x32xf32>
    %85 = arith.subf %84, %43 : vector<2x8x32xf32>
    %86 = math.exp %85 : vector<2x8x32xf32>
    %87 = arith.truncf %86 : vector<2x8x32xf32> to vector<2x8x32xbf16>
    %c0_23 = arith.constant 0 : index
    %c0_24 = arith.constant 0 : index
    %c0_25 = arith.constant 0 : index
    %88 = vector.load %arg4[%c0_23, %c0_24, %c0_25] : memref<2x8x32xbf16, #tpu.memory_space<vmem>>, vector<2x8x32xbf16>
    tpu.vector_store %arg4[%c0_23, %c0_24, %c0_25], %87 {strides = array<i32>} : memref<2x8x32xbf16, #tpu.memory_space<vmem>>, vector<2x8x32xbf16>,
    return
  }
  func.func @transform_0(%arg0: i32) -> (i32, i32, i32) {
    %c0_i32 = arith.constant 0 : i32
    %c0_i32_0 = arith.constant 0 : i32
    %c0_i32_1 = arith.constant 0 : i32
    return %arg0, %c0_i32, %c0_i32_0 : i32, i32, i32
  }
  func.func @transform_1(%arg0: i32) -> (i32, i32) {
    %c0_i32 = arith.constant 0 : i32
    %c0_i32_0 = arith.constant 0 : i32
    %c0_i32_1 = arith.constant 0 : i32
    return %c0_i32, %c0_i32_0 : i32, i32
  }
  func.func @transform_2(%arg0: i32) -> (i32, i32) {
    %c0_i32 = arith.constant 0 : i32
    %c0_i32_0 = arith.constant 0 : i32
    %c0_i32_1 = arith.constant 0 : i32
    return %c0_i32, %c0_i32_0 : i32, i32
  }
  func.func @transform_3(%arg0: i32) -> (i32, i32, i32) {
    %c0_i32 = arith.constant 0 : i32
    %c0_i32_0 = arith.constant 0 : i32
    %c0_i32_1 = arith.constant 0 : i32
    return %arg0, %c0_i32, %c0_i32_0 : i32, i32, i32
  }
}

</mosaic_0001>

<bundles_post_ra>
// kernel: tpu_custom_call.1
= control target key start
LH: loop header
LB: loop body
LE: loop exit
PB: predicated region body
PF: predicated region fallthrough
CT: control target
= control target key end

     0   :  { %6 = vsyncpa [#allocation3], 0  ;;  %s143_s0 = inlined_call_operand.hbm [shape: f32[2,8,32], index: 0, kind: input, shape index: {}]   ;;  %s144_s1 = inlined_call_operand.hbm [shape: f32[2,8,32], index: 1, kind: output, shape index: {}]  }
   0x1   :  { %7 = vsyncpa [#allocation4], 0  ;;  %s99_s6 = smov [#allocation2]   ;;  %s51_s10 = scalar_lea.hbm %s143_s0, 256 }
   0x2   :  { %s13_s7 = sshll.u32 %s99_s6, 4  ;;  %p52_p0 = scmp.ne.s32.totalorder %s143_s0, %s51_s10  ;;  %s14_s7 = int_to_ptr.vmem [resolvable:$true] %s13_s7 }
   0x3   :  { %p55_p1 = scmp.lt.u32.totalorder %s51_s10, %s143_s0 }
   0x5   :  { %p57_p2 = pnand %p55_p1, %p52_p0 }
   0x7   :  { %60 = shalt.err (!%p57_p2)
}
   0x8   :  { %s61_s15 = scalar_lea.vmem %s14_s7, 256  ;;  %p66_p4 = scmp.lt.s32.totalorder %s14_s7, %s14_s7 }
   0x9   :  { %p62_p3 = scmp.ne.s32.totalorder %s14_s7, %s61_s15  ;;  %p67_p5 = scmp.lt.s32.totalorder %s61_s15, %s61_s15 }
   0xb   :  { %p68_p6 = por %p67_p5, %p66_p4 }
   0xd   :  { %p69_p7 = pnand %p68_p6, %p62_p3 }
   0xf   :  { %72 = shalt.err (!%p69_p7)
}
  0x10   :  { %s100_s16 = smov 128   ;;  %s101_s17 = smov 8  }
  0x11   :  { %19 = dma.hbm_to_vmem [thread:$0]  %s143_s0, 256, %s14_s7, [#allocation3], %s100_s16, %s100_s16, %s101_s17  }
  0x12   :  { %95 = dma.done.wait [#allocation3], 256  }
  0x13   :  { %96 = vsyncadd [#allocation3], 4294967040  ;;  %s102_s20 = smov [#allocation5]   ;;  %v23_v0 = vld [vmem:[#allocation2] sm:$0xff]  ;;  %vm27_vm0 = vcmask 261120   ;;  %v24_v1 = vld [vmem:[#allocation2 + $0x8] sm:$0xff] }
  0x14   :  { %s35_s21 = sshll.u32 %s102_s20, 4  ;;  %v25_v2 = vrot.slane %v23_v0, 7  ;;  %v26_v3 = vrot.slane %v24_v1, 7  ;;  %s36_s21 = int_to_ptr.vmem [resolvable:$true] %s35_s21 }
  0x15   :  { %s73_s22 = scalar_lea.vmem %s36_s21, 256  ;;  %p78_p9 = scmp.lt.s32.totalorder %s36_s21, %s36_s21 }
  0x16   :  { %28 = vst.msk [vmem:[#allocation5] sm:$0xff] %vm27_vm0, %v25_v2  ;;  %29 = vst.msk [vmem:[#allocation5 + $0x8] sm:$0xff] %vm27_vm0, %v26_v3  ;;  %p74_p8 = scmp.ne.s32.totalorder %s36_s21, %s73_s22  ;;  %p79_p10 = scmp.lt.s32.totalorder %s73_s22, %s73_s22 }
  0x18   :  { %p80_p11 = por %p79_p10, %p78_p9 }
  0x1a   :  { %p81_p12 = pnand %p80_p11, %p74_p8 }
  0x1c   :  { %84 = shalt.err (!%p81_p12)
}
  0x1d   :  { %s85_s24 = scalar_lea.hbm %s144_s1, 256 }
  0x1e   :  { %p86_p13 = scmp.ne.s32.totalorder %s144_s1, %s85_s24  ;;  %p89_p0 = scmp.lt.u32.totalorder %s85_s24, %s144_s1 }
  0x20   :  { %p91_p1 = pnand %p89_p0, %p86_p13 }
  0x22   :  { %94 = shalt.err (!%p91_p1)
}
  0x23   :  { %41 = dma.vmem_to_hbm [thread:$0]  %s36_s21, 256, %s144_s1, [#allocation4], %s100_s16, %s100_s16, %s101_s17  }
  0x24   :  { %97 = dma.done.wait [#allocation4], 256  }
  0x25   :  { %98 = vsyncadd [#allocation4], 4294967040 }
  0x26   :  { %45 = vsyncpa [#allocation3], 1 }
  0x27   :  { %46 = vsyncpa [#allocation4], 1 }

// kernel: tpu_custom_call.1
= control target key start
LH: loop header
LB: loop body
LE: loop exit
PB: predicated region body
PF: predicated region fallthrough
CT: control target
= control target key end

     0   :  { %vm26_vm0 = vcmask 1040384   ;;  %vm49_vm1 = vsmask.f32 256  ;;  %s516_s14 = smov 64   ;;  %v517_v4 = vmov 0.0   ;;  %vm519_vm3 = vmmov 0   ;;  %s657_s0 = inlined_call_operand.vmem [shape: bf16[2,8,32], index: 0, kind: input, shape index: {}]   ;;  %s658_s1 = inlined_call_operand.vmem [shape: bf16[96,64], index: 1, kind: input, shape index: {}]   ;;  %s659_s2 = inlined_call_operand.vmem [shape: f32[1,64], index: 2, kind: input, shape index: {}]   ;;  %s660_s3 = inlined_call_operand.hbm [shape: bf16[2,8,32], index: 3, kind: output, shape index: {}]  }
   0x1   :  { %v448_v0 = vld [vmem:[%s657_s0] ss:$0 sps:$4 sm:$0xff]   ;;  %v449_v3 = vld [vmem:[%s657_s0 + $0x4] ss:$0 sps:$4 sm:$0xff]   ;;  %425 = vmatprep.subr.bf16.mxu0 %v517_v4  ;;  %vm554_vm2 = vmand %vm26_vm0, %vm49_vm1  ;;  %s518_s0 = smov 32   ;;  %437 = vmatprep.mubr.msk.bf16.mxu0 %vm519_vm3, %v517_v4 }
   0x2   :  { %v33_v1 = vshrl.u32 %v448_v0, 16  ;;  %v36_v2 = vshll.u32 %v448_v0, 16  ;;  %59 = vrot.lane.b32.xlu1 %v448_v0, %s516_s14  ;;  %v450_v5 = vld [vmem:[%s658_s1] sm:$0xff]   ;;  %v40_v8 = vshrl.u32 %v449_v3, 16  ;;  %v43_v9 = vshll.u32 %v449_v3, 16  ;;  %v451_v10 = vld [vmem:[%s658_s1 + $0x8] sm:$0xff]  }
   0x3   :  { %426 = vmatpush3.bf16.msra.mxu0 %v450_v5  ;;  %v452_v15 = vld [vmem:[%s658_s1 + $0x10] sm:$0xff]  }
   0x4   :  { %v35_v6 = vrot.slane %v33_v1, 7  ;;  %v42_v12 = vrot.slane %v40_v8, 7  ;;  %427 = vmatprep.subr.bf16.mxu0 %v517_v4 }
   0x6   :  { %v38_v11 = vor.u32 %v36_v2, %v35_v6  ;;  %61 = vrot.lane.b32.xlu1 %v449_v3, %s516_s14  ;;  %v45_v14 = vor.u32 %v43_v9, %v42_v12 }
   0x7   :  { %428 = vmatpush3.bf16.msra.mxu0 %v451_v10 }
   0x8   :  { %v51_v13 = vsel %vm554_vm2, 0, %v38_v11  ;;  %v52_v16 = vsel %vm554_vm2, 0, %v45_v14  ;;  %429 = vmatprep.subr.bf16.mxu0 %v517_v4 }
   0x9   :  { %55 = vrot.lane.b32.xlu0 %v51_v13, %s518_s0 }
   0xa   :  { %8 = vsyncpa [#allocation3], 0  ;;  %v453_v17 = vld [vmem:[%s658_s1 + $0x18] sm:$0xff]   ;;  %v454_v18 = vld [vmem:[%s658_s1 + $0x20] sm:$0xff]   ;;  %v24_v20 = vrot.slane %v448_v0, 7  ;;  %v25_v22 = vrot.slane %v449_v3, 7 }
   0xb   :  { %430 = vmatpush3.bf16.msra.mxu0 %v452_v15  ;;  %v455_v19 = vld [vmem:[%s658_s1 + $0x28] sm:$0xff]   ;;  %vm63_vm4 = vcmask 261120   ;;  %vm68_vm5 = vcmask 523264   ;;  %vm133_vm6 = vcmask 785408   ;;  %v409_v33 = vld [vmem:[%s659_s2] ss:$0 sm:$0xff] }
   0xc   :  { %431 = vmatprep.subr.bf16.mxu0 %v517_v4  ;;  %v29_v24 = vsel %vm26_vm0, 0, %v24_v20  ;;  %v31_v25 = vsel %vm26_vm0, 0, %v25_v22  ;;  %s520_s2 = smov 96   ;;  %vm230_vm7 = vcmask 1041408   ;;  %vm253_vm8 = vcmask 1043456   ;;  %s521_s30 = smov [#allocation2]  }
   0xd   :  { %57 = vrot.lane.b32.xlu0 %v52_v16, %s518_s0  ;;  %v266_v22 = vlaneseq  ;;  %vm388_vm9 = vcmask 257024   ;;  %s396_s4 = sshll.u32 %s521_s30, 4  ;;  %s397_s4 = int_to_ptr.vmem [resolvable:$true] %s396_s4 }
   0xe   :  { %s492_s5 = scalar_lea.vmem %s397_s4, 128  ;;  %p497_p1 = scmp.lt.s32.totalorder %s397_s4, %s397_s4 }
   0xf   :  { %432 = vmatpush3.bf16.msra.mxu0 %v453_v17  ;;  %p493_p0 = scmp.ne.s32.totalorder %s397_s4, %s492_s5  ;;  %p498_p2 = scmp.lt.s32.totalorder %s492_s5, %s492_s5 }
  0x10   :  { %433 = vmatprep.subr.bf16.mxu0 %v517_v4 }
  0x11   :  { %p499_p3 = por %p498_p2, %p497_p1 }
  0x13   :  { %434 = vmatpush3.bf16.msra.mxu0 %v454_v18  ;;  %p500_p4 = pnand %p499_p3, %p493_p0 }
  0x14   :  { %435 = vmatprep.subr.bf16.mxu0 %v517_v4 }
  0x17   :  { %436 = vmatpush3.bf16.msra.mxu0 %v455_v19 }
  0x74   :  { %v60_v21 = vpop.permute.xlu1 %59 }
  0x78   :  { %v62_v27 = vpop.permute.xlu1 %61 }
  0x7b   :  { %v56_v23 = vpop.permute.xlu0 %55 }
  0x7c   :  { %v65_v26 = vsel %vm63_vm4, %v29_v24, %v56_v23  ;;  %v267_v23 = vshrl.u32 %v266_v22, 7 }
  0x7d   :  { %v70_v30 = vsel %vm68_vm5, %v65_v26, %v60_v21 }
  0x7e   :  { %v268_v24 = vsub.s32 7, %v267_v23 }
  0x7f   :  { %v58_v28 = vpop.permute.xlu0 %57 }
  0x80   :  { %v67_v29 = vsel %vm63_vm4, %v31_v25, %v58_v28 }
  0x81   :  { %v72_v31 = vsel %vm68_vm5, %v67_v29, %v62_v27 }
  0x82   :  { %v410_v32 = vcombine.low %v70_v30, %v72_v31 }
  0x84   :  { %438 = vmatmul.mubr.msk.bf16.vlgmr.msra.gmra.mrb[0].mxu0 %vm133_vm6, %v410_v32 }
 0x157   :  { %v171_v34 = vpop.f32.mrb[0].mxu0 }
 0x158   :  { %v585_v35 = vadd.f32 %v409_v33, %v171_v34  ;;  %v439_v36 = vpop.f32.mrb[1].mxu0 }
 0x159   :  { %v174_v37 = vpop.f32.mrb[2].mxu0 }
 0x15a   :  { %v180_v38 = vand.u32 2147483647, %v585_v35  ;;  %v588_v39 = vadd.f32 %v409_v33, %v174_v37  ;;  %v440_v40 = vpop.f32.mrb[3].mxu0  ;;  %v178_v51 = vmin.f32 %v585_v35, 0.0 }
 0x15c   :  { %v182_v41 = vsub.f32 0.0, %v180_v38  ;;  %v181_v42 = vand.u32 2147483647, %v588_v39  ;;  %v179_v55 = vmin.f32 %v588_v39, 0.0 }
 0x15e   :  { %v184_v43 = vmul.f32 1.442695, %v182_v41  ;;  %v183_v44 = vsub.f32 0.0, %v181_v42 }
 0x160   :  { %456 = vpow2.f32 %v184_v43  ;;  %v186_v45 = vmul.f32 1.442695, %v183_v44 }
 0x162   :  { %458 = vpow2.f32 %v186_v45 }
 0x16a   :  { %v457_v46 = vpop.eup %456 }
 0x16b   :  { %v188_v47 = vadd.f32 1.0, %v457_v46 }
 0x16c   :  { %v459_v48 = vpop.eup %458 }
 0x16d   :  { %460 = vlog2.f32 %v188_v47  ;;  %v189_v49 = vadd.f32 1.0, %v459_v48 }
 0x16f   :  { %462 = vlog2.f32 %v189_v49 }
 0x177   :  { %v461_v50 = vpop.eup %460 }
 0x178   :  { %v191_v52 = vmul.f32 0.6931472, %v461_v50 }
 0x179   :  { %v463_v53 = vpop.eup %462 }
 0x17a   :  { %v592_v54 = vsub.f32 %v178_v51, %v191_v52  ;;  %v193_v56 = vmul.f32 0.6931472, %v463_v53 }
 0x17c   :  { %v595_v57 = vsub.f32 %v179_v55, %v193_v56  ;;  %v200_v58 = vrot.slane %v592_v54, 7  ;;  %v196_v20 = vsub.f32 %v592_v54, %v585_v35 }
 0x17e   :  { %202 = vrot.lane.b32.xlu0 %v200_v58, %s520_s2  ;;  %v201_v59 = vrot.slane %v595_v57, 7  ;;  %v197_v21 = vsub.f32 %v595_v57, %v588_v39 }
 0x180   :  { %204 = vrot.lane.b32.xlu1 %v201_v59, %s520_s2 }
 0x1f0   :  { %v203_v60 = vpop.permute.xlu0 %202 }
 0x1f1   :  { %v208_v61 = vsel %vm26_vm0, 0.0, %v203_v60 }
 0x1f2   :  { %212 = vrot.lane.b32.xlu0 %v208_v61, %s518_s0  ;;  %v205_v62 = vpop.permute.xlu1 %204 }
 0x1f3   :  { %v209_v63 = vsel %vm26_vm0, 0.0, %v205_v62 }
 0x1f4   :  { %214 = vrot.lane.b32.xlu1 %v209_v63, %s518_s0 }
 0x264   :  { %v213_v0 = vpop.permute.xlu0 %212 }
 0x265   :  { %v218_v1 = vadd.f32 %v213_v0, %v592_v54 }
 0x266   :  { %v215_v2 = vpop.permute.xlu1 %214 }
 0x267   :  { %v222_v3 = vrot.slane %v218_v1, 6  ;;  %v219_v4 = vadd.f32 %v215_v2, %v595_v57 }
 0x269   :  { %v223_v5 = vrot.slane %v219_v4, 6  ;;  %224 = vrot.lane.b32.xlu0 %v222_v3, %s520_s2 }
 0x26b   :  { %226 = vrot.lane.b32.xlu1 %v223_v5, %s520_s2 }
 0x2db   :  { %v225_v6 = vpop.permute.xlu0 %224 }
 0x2dc   :  { %v231_v7 = vsel %vm230_vm7, 0.0, %v225_v6 }
 0x2dd   :  { %235 = vrot.lane.b32.xlu0 %v231_v7, %s518_s0  ;;  %v227_v8 = vpop.permute.xlu1 %226 }
 0x2de   :  { %v232_v9 = vsel %vm230_vm7, 0.0, %v227_v8 }
 0x2df   :  { %237 = vrot.lane.b32.xlu1 %v232_v9, %s518_s0 }
 0x34f   :  { %v236_v10 = vpop.permute.xlu0 %235 }
 0x350   :  { %v241_v11 = vadd.f32 %v236_v10, %v218_v1 }
 0x351   :  { %v238_v12 = vpop.permute.xlu1 %237 }
 0x352   :  { %v245_v13 = vrot.slane %v241_v11, 4  ;;  %v242_v14 = vadd.f32 %v238_v12, %v219_v4 }
 0x354   :  { %v246_v15 = vrot.slane %v242_v14, 4  ;;  %247 = vrot.lane.b32.xlu0 %v245_v13, %s520_s2 }
 0x356   :  { %249 = vrot.lane.b32.xlu1 %v246_v15, %s520_s2 }
 0x3c6   :  { %v248_v16 = vpop.permute.xlu0 %247 }
 0x3c7   :  { %v254_v17 = vsel %vm253_vm8, 0.0, %v248_v16 }
 0x3c8   :  { %258 = vrot.lane.b32.xlu0 %v254_v17, %s518_s0  ;;  %v250_v18 = vpop.permute.xlu1 %249 }
 0x3c9   :  { %v255_v19 = vsel %vm253_vm8, 0.0, %v250_v18 }
 0x3ca   :  { %260 = vrot.lane.b32.xlu1 %v255_v19, %s518_s0 }
 0x3cc   :  { %278 = vrot.lane.b32.xlu0 %v196_v20, %s520_s2 }
 0x3ce   :  { %280 = vrot.lane.b32.xlu1 %v197_v21, %s520_s2 }
 0x43a   :  { %v259_v25 = vpop.permute.xlu0 %258 }
 0x43b   :  { %v264_v26 = vadd.f32 %v259_v25, %v241_v11 }
 0x43c   :  { %v261_v27 = vpop.permute.xlu1 %260 }
 0x43d   :  { %v269_v28 = vrot.slane %v264_v26, %v268_v24  ;;  %v265_v29 = vadd.f32 %v261_v27, %v242_v14 }
 0x43e   :  { %v279_v33 = vpop.permute.xlu0 %278 }
 0x43f   :  { %v274_v30 = vsub.f32 %v269_v28, %v264_v26  ;;  %v273_v31 = vrot.slane %v265_v29, %v268_v24  ;;  %v284_v35 = vadd.f32 %v279_v33, %v592_v54 }
 0x440   :  { %v281_v34 = vpop.permute.xlu1 %280 }
 0x441   :  { %v275_v32 = vsub.f32 %v273_v31, %v265_v29  ;;  %288 = vrot.lane.b32.xlu0 %v274_v30, %s520_s2  ;;  %v285_v37 = vadd.f32 %v281_v34, %v595_v57 }
 0x443   :  { %290 = vrot.lane.b32.xlu1 %v275_v32, %s520_s2 }
 0x4b3   :  { %v628_v36 = vpop.permute.xlu0 %288 }
 0x4b4   :  { %v294_v38 = vadd.f32 %v628_v36, %v284_v35 }
 0x4b5   :  { %v632_v39 = vpop.permute.xlu1 %290 }
 0x4b6   :  { %v298_v40 = vrot.slane %v294_v38, 7  ;;  %v295_v41 = vadd.f32 %v632_v39, %v285_v37 }
 0x4b8   :  { %v302_v42 = vsel %vm26_vm0, -1e+30, %v298_v40  ;;  %v299_v43 = vrot.slane %v295_v41, 7 }
 0x4b9   :  { %v306_v44 = vsub.f32 %v294_v38, %v302_v42  ;;  %v304_v58 = vmax.f32 %v294_v38, %v302_v42 }
 0x4ba   :  { %v303_v45 = vsel %vm26_vm0, -1e+30, %v299_v43 }
 0x4bb   :  { %v308_v46 = vand.u32 2147483647, %v306_v44  ;;  %v307_v47 = vsub.f32 %v295_v41, %v303_v45  ;;  %v305_v62 = vmax.f32 %v295_v41, %v303_v45 }
 0x4bd   :  { %v310_v48 = vsub.f32 0.0, %v308_v46  ;;  %v309_v49 = vand.u32 2147483647, %v307_v47 }
 0x4bf   :  { %v312_v50 = vmul.f32 1.442695, %v310_v48  ;;  %v311_v51 = vsub.f32 0.0, %v309_v49 }
 0x4c1   :  { %464 = vpow2.f32 %v312_v50  ;;  %v314_v52 = vmul.f32 1.442695, %v311_v51 }
 0x4c3   :  { %466 = vpow2.f32 %v314_v52 }
 0x4cb   :  { %v465_v53 = vpop.eup %464 }
 0x4cc   :  { %v316_v54 = vadd.f32 1.0, %v465_v53 }
 0x4cd   :  { %v467_v55 = vpop.eup %466 }
 0x4ce   :  { %468 = vlog2.f32 %v316_v54  ;;  %v317_v56 = vadd.f32 1.0, %v467_v55 }
 0x4d0   :  { %470 = vlog2.f32 %v317_v56 }
 0x4d8   :  { %v469_v57 = vpop.eup %468 }
 0x4d9   :  { %v319_v59 = vmul.f32 0.6931472, %v469_v57 }
 0x4da   :  { %v471_v60 = vpop.eup %470 }
 0x4db   :  { %v322_v61 = vadd.f32 %v319_v59, %v304_v58  ;;  %v321_v63 = vmul.f32 0.6931472, %v471_v60 }
 0x4dd   :  { %v326_v0 = vrot.slane %v322_v61, 6  ;;  %v323_v1 = vadd.f32 %v321_v63, %v305_v62 }
 0x4df   :  { %v330_v2 = vsel %vm230_vm7, -1e+30, %v326_v0  ;;  %v327_v3 = vrot.slane %v323_v1, 6 }
 0x4e0   :  { %v334_v4 = vsub.f32 %v322_v61, %v330_v2  ;;  %v332_v18 = vmax.f32 %v322_v61, %v330_v2 }
 0x4e1   :  { %v331_v5 = vsel %vm230_vm7, -1e+30, %v327_v3 }
 0x4e2   :  { %v336_v6 = vand.u32 2147483647, %v334_v4  ;;  %v335_v7 = vsub.f32 %v323_v1, %v331_v5  ;;  %v333_v22 = vmax.f32 %v323_v1, %v331_v5 }
 0x4e4   :  { %v338_v8 = vsub.f32 0.0, %v336_v6  ;;  %v337_v9 = vand.u32 2147483647, %v335_v7 }
 0x4e6   :  { %v340_v10 = vmul.f32 1.442695, %v338_v8  ;;  %v339_v11 = vsub.f32 0.0, %v337_v9 }
 0x4e8   :  { %472 = vpow2.f32 %v340_v10  ;;  %v342_v12 = vmul.f32 1.442695, %v339_v11 }
 0x4ea   :  { %474 = vpow2.f32 %v342_v12 }
 0x4f2   :  { %v473_v13 = vpop.eup %472 }
 0x4f3   :  { %v344_v14 = vadd.f32 1.0, %v473_v13 }
 0x4f4   :  { %v475_v15 = vpop.eup %474 }
 0x4f5   :  { %476 = vlog2.f32 %v344_v14  ;;  %v345_v16 = vadd.f32 1.0, %v475_v15 }
 0x4f7   :  { %478 = vlog2.f32 %v345_v16 }
 0x4ff   :  { %v477_v17 = vpop.eup %476 }
 0x500   :  { %v347_v19 = vmul.f32 0.6931472, %v477_v17 }
 0x501   :  { %v479_v20 = vpop.eup %478 }
 0x502   :  { %v350_v21 = vadd.f32 %v347_v19, %v332_v18  ;;  %v349_v23 = vmul.f32 0.6931472, %v479_v20 }
 0x504   :  { %v354_v24 = vrot.slane %v350_v21, 4  ;;  %v351_v25 = vadd.f32 %v349_v23, %v333_v22 }
 0x506   :  { %v358_v26 = vsel %vm253_vm8, -1e+30, %v354_v24  ;;  %v355_v27 = vrot.slane %v351_v25, 4 }
 0x507   :  { %v362_v28 = vsub.f32 %v350_v21, %v358_v26  ;;  %v360_v44 = vmax.f32 %v350_v21, %v358_v26 }
 0x508   :  { %v359_v29 = vsel %vm253_vm8, -1e+30, %v355_v27 }
 0x509   :  { %v364_v30 = vand.u32 2147483647, %v362_v28  ;;  %v363_v31 = vsub.f32 %v351_v25, %v359_v29  ;;  %v361_v48 = vmax.f32 %v351_v25, %v359_v29 }
 0x50b   :  { %v366_v32 = vsub.f32 0.0, %v364_v30  ;;  %v365_v33 = vand.u32 2147483647, %v363_v31 }
 0x50d   :  { %v368_v34 = vmul.f32 1.442695, %v366_v32  ;;  %v367_v35 = vsub.f32 0.0, %v365_v33 }
 0x50f   :  { %480 = vpow2.f32 %v368_v34  ;;  %v370_v37 = vmul.f32 1.442695, %v367_v35 }
 0x511   :  { %482 = vpow2.f32 %v370_v37 }
 0x519   :  { %v481_v38 = vpop.eup %480 }
 0x51a   :  { %v372_v40 = vadd.f32 1.0, %v481_v38 }
 0x51b   :  { %v483_v41 = vpop.eup %482 }
 0x51c   :  { %484 = vlog2.f32 %v372_v40  ;;  %v373_v42 = vadd.f32 1.0, %v483_v41 }
 0x51e   :  { %486 = vlog2.f32 %v373_v42 }
 0x526   :  { %v485_v43 = vpop.eup %484 }
 0x527   :  { %v375_v45 = vmul.f32 0.6931472, %v485_v43 }
 0x528   :  { %v487_v46 = vpop.eup %486 }
 0x529   :  { %v378_v47 = vadd.f32 %v375_v45, %v360_v44  ;;  %v377_v49 = vmul.f32 0.6931472, %v487_v46 }
 0x52b   :  { %v380_v50 = vsub.f32 %v378_v47, %v628_v36  ;;  %v379_v51 = vadd.f32 %v377_v49, %v361_v48 }
 0x52d   :  { %v382_v52 = vmul.f32 1.442695, %v380_v50  ;;  %v381_v53 = vsub.f32 %v379_v51, %v632_v39 }
 0x52f   :  { %488 = vpow2.f32 %v382_v52  ;;  %v384_v54 = vmul.f32 1.442695, %v381_v53 }
 0x531   :  { %490 = vpow2.f32 %v384_v54 }
 0x539   :  { %v489_v55 = vpop.eup %488 }
 0x53a   :  { %v386_v56 = vpack.c.bf16 %v489_v55, %v489_v55 }
 0x53b   :  { %v491_v57 = vpop.eup %490 }
 0x53c   :  { %389 = vst.msk [vmem:[#allocation2] sm:$0xf] %vm388_vm9, %v386_v56  ;;  %v387_v58 = vpack.c.bf16 %v491_v57, %v491_v57 }
 0x53e   :  { %390 = vst.msk [vmem:[#allocation2 + $0x4] sm:$0xf] %vm388_vm9, %v387_v58 }
 0x53f   :  { %503 = shalt.err (!%p500_p4)
}
 0x540   :  { %s504_s8 = scalar_lea.hbm %s660_s3, 128 }
 0x541   :  { %p505_p5 = scmp.ne.s32.totalorder %s660_s3, %s504_s8  ;;  %p508_p6 = scmp.lt.u32.totalorder %s504_s8, %s660_s3 }
 0x543   :  { %p510_p7 = pnand %p508_p6, %p505_p5 }
 0x545   :  { %513 = shalt.err (!%p510_p7)
}
 0x546   :  { %s522_s13 = smov 4  }
 0x547   :  { %402 = dma.vmem_to_hbm [thread:$0]  %s397_s4, 128, %s660_s3, [#allocation3], %s516_s14, %s516_s14, %s522_s13  }
 0x548   :  { %514 = dma.done.wait [#allocation3], 128  }
 0x549   :  { %515 = vsyncadd [#allocation3], 4294967168 }
 0x54a   :  { %406 = vsyncpa [#allocation3], 1 }

</bundles_post_ra>
